<compile_context>
chip_gen: v6e
topology: v6e:2x2x1
jax: 0.10.0
libtpu: 0.0.40
codegen_flags: <defaults>
</compile_context>

<pallas_src>
import functools

import jax
import jax.numpy as jnp
from jax.experimental import pallas as pl
from jax.experimental.pallas import tpu as pltpu

MIB = 1024 * 1024
# Conservative budgets: fit v7x's 64 MiB/TC with headroom (v5e/v6e trivially).
_FUSED_VMEM_BUDGET = 40 * MIB
_TILED_VMEM_BUDGET = 40 * MIB
_VMEM_LIMIT_BYTES = 48 * MIB


def _round_up(x, m):
    return ((x + m - 1) // m) * m


def _block_spec(block_shape, index_map, buffers=None):
    """BlockSpec with an explicit pipeline buffer count (pl.Buffered); falls
    back to the default double-buffered spec if this jax rejects pipeline_mode."""
    if buffers is not None:
        try:
            return pl.BlockSpec(block_shape, index_map,
                                pipeline_mode=pl.Buffered(buffers))
        except Exception:  # pragma: no cover - older jax without pipeline_mode
            pass
    return pl.BlockSpec(block_shape, index_map)


# ---------------------------------------------------------------------------
# Fused path: all layers in one pallas_call, A^T resident in VMEM.
# ---------------------------------------------------------------------------
def _fused_kernel(xT0_ref, aT_ref, out_ref, cur_ref, *, scale):
    """Grid step l computes xT_{l+1} = xT_l @ A^T and adds it to the running
    layer sum held in out_ref (output block index is constant -> VMEM resident).

    xT0_ref: (D, N) f32  layer-0 embeddings (read once, at l == 0)
    aT_ref : (N, N) bf16 transposed normalized adjacency, VMEM resident
    out_ref: (D, N) f32  running sum of layer embeddings -> mean at finalize
    cur_ref: (D, N) bf16 current-layer embeddings (matmul LHS)
    """
    l = pl.program_id(0)

    @pl.when(l == 0)
    def _():
        x0 = xT0_ref[...]
        cur_ref[...] = x0.astype(cur_ref.dtype)
        out_ref[...] = x0

    nxt = jnp.dot(cur_ref[...], aT_ref[...], preferred_element_type=jnp.float32)
    out_ref[...] += nxt
    cur_ref[...] = nxt.astype(cur_ref.dtype)

    @pl.when(l == pl.num_programs(0) - 1)
    def _():
        out_ref[...] *= scale


def _fused_vmem_bytes(d_pad, n_pad):
    return (n_pad * n_pad * 2            # A^T bf16, single-buffered
            + 2 * d_pad * n_pad * 4      # xT0 f32 (worst-case 2 buffers)
            + d_pad * n_pad * 4          # out f32 (single resident block)
            + d_pad * n_pad * 2          # cur bf16 scratch
            + d_pad * n_pad * 4)         # dot result temp


def _fused_forward(xT0, aT, num_layers, d_pad, n_pad):
    kernel = functools.partial(_fused_kernel, scale=1.0 / float(num_layers + 1))
    flops = 2 * num_layers * d_pad * n_pad * n_pad
    bytes_accessed = (n_pad * n_pad * 2      # A^T streamed exactly once (bf16)
                      + d_pad * n_pad * 4    # xT0 in (f32)
                      + d_pad * n_pad * 4)   # mean out (f32)
    return pl.pallas_call(
        kernel,
        out_shape=jax.ShapeDtypeStruct((d_pad, n_pad), jnp.float32),
        grid_spec=pltpu.PrefetchScalarGridSpec(
            num_scalar_prefetch=0,
            grid=(num_layers,),
            in_specs=[
                _block_spec((d_pad, n_pad), lambda l: (0, 0), buffers=1),
                _block_spec((n_pad, n_pad), lambda l: (0, 0), buffers=1),
            ],
            out_specs=pl.BlockSpec((d_pad, n_pad), lambda l: (0, 0)),
            scratch_shapes=[pltpu.VMEM((d_pad, n_pad), jnp.bfloat16)],
        ),
        compiler_params=pltpu.CompilerParams(
            dimension_semantics=("arbitrary",),
            vmem_limit_bytes=_VMEM_LIMIT_BYTES,
        ),
        cost_estimate=pl.CostEstimate(
            flops=flops, transcendentals=0, bytes_accessed=bytes_accessed),
    )(xT0, aT)


# ---------------------------------------------------------------------------
# Tiled fallback path: one pallas_call per layer (large graphs).
# ---------------------------------------------------------------------------
def _layer_kernel(xT_ref, aT_ref, out_ref):
    """One (j, k) grid step of xT_{l+1} = xT_l @ A_norm^T.

    xT_ref : (n_k, D, tk) VMEM-resident blocked layer-l embeddings (bf16)
    aT_ref : (tk, tn)     streamed transposed adjacency tile (bf16)
    out_ref: (D, tn)      f32 output block; block index (0, j) is constant over
                          the k axis, so it doubles as the accumulator.
    """
    k = pl.program_id(1)

    @pl.when(k == 0)
    def _():
        out_ref[...] = jnp.zeros_like(out_ref)

    out_ref[...] += jnp.dot(xT_ref[k], aT_ref[...],
                            preferred_element_type=jnp.float32)


def _choose_tiles(n_pad, d_pad, budget_bytes):
    """Largest MXU/DMA-friendly (tk, tn) dividing n_pad that fits the budget:
    3 buffers of the streamed A^T tile + resident xT + out block."""
    resident = n_pad * d_pad * 2                       # blocked xT bf16, 1 buffer
    cands = [(tk, tn) for tk in (2048, 1024, 512, 256, 128) if n_pad % tk == 0
             for tn in (1024, 512, 256, 128) if n_pad % tn == 0]
    cands.sort(key=lambda t: (t[0] * t[1], t[1]), reverse=True)
    for tk, tn in cands:
        need = resident + 3 * tk * tn * 2 + 2 * d_pad * tn * 4
        if need <= budget_bytes:
            return tk, tn
    # TODO(synk): if even (128,128) + resident xT overflows (huge N*D), drop the
    # resident-xT layout and stream both operands (or move to the CSR kernel).
    return 128, 128


def _propagate_layer(xT_blocks, aT, d_pad, n_pad, tk, tn):
    n_k = n_pad // tk
    grid = (n_pad // tn, n_k)
    flops = 2 * d_pad * n_pad * n_pad
    bytes_accessed = (n_pad * n_pad * 2      # A^T streamed once (bf16)
                      + d_pad * n_pad * 2    # resident xT (bf16)
                      + d_pad * n_pad * 4)   # output (f32)
    return pl.pallas_call(
        _layer_kernel,
        out_shape=jax.ShapeDtypeStruct((d_pad, n_pad), jnp.float32),
        grid_spec=pltpu.PrefetchScalarGridSpec(
            num_scalar_prefetch=0,
            grid=grid,
            in_specs=[
                # Layer-l embeddings: VMEM-resident, single-buffered.
                _block_spec((n_k, d_pad, tk), lambda j, k: (0, 0, 0), buffers=1),
                # A^T streamed tile-by-tile, triple-buffered (DMA-bound stream).
                _block_spec((tk, tn), lambda j, k: (k, j), buffers=3),
            ],
            out_specs=pl.BlockSpec((d_pad, tn), lambda j, k: (0, j)),
        ),
        compiler_params=pltpu.CompilerParams(
            dimension_semantics=("parallel", "arbitrary"),
            vmem_limit_bytes=_VMEM_LIMIT_BYTES,
        ),
        cost_estimate=pl.CostEstimate(
            flops=flops, transcendentals=0, bytes_accessed=bytes_accessed),
    )(xT_blocks, aT)


def _tiled_forward(xT0, aT, num_layers, d_pad, n_pad):
    tk, tn = _choose_tiles(n_pad, d_pad, _TILED_VMEM_BUDGET)
    n_k = n_pad // tk

    def to_blocks(xT_f32):
        # (d_pad, n_pad) f32 -> (n_k, d_pad, tk) bf16 matmul LHS.
        return (xT_f32.astype(jnp.bfloat16)
                .reshape(d_pad, n_k, tk)
                .transpose(1, 0, 2))

    acc = xT0
    cur = xT0
    for _ in range(num_layers):  # static unroll; num_layers is small
        cur = _propagate_layer(to_blocks(cur), aT, d_pad, n_pad, tk, tn)
        acc = acc + cur
    return acc * (1.0 / float(num_layers + 1))


# ---------------------------------------------------------------------------
# Graph prep + forward wrapper.
# ---------------------------------------------------------------------------
def build_normalized_adjacency_T(edge_index, num_nodes, n_pad):
    """A_norm^T[r, c] = sum over (possibly repeated) edges r->c of
    deg^-1/2[r] * deg^-1/2[c], with deg = in-degree over targets (col),
    matching LightGCNConv / MessagePassing(aggr='add') semantics.  Built in f32
    (exact duplicate-edge accumulation), cast to bf16 for the MXU stream;
    accumulation stays f32 in-kernel."""
    row, col = edge_index[0], edge_index[1]
    deg = jnp.zeros((num_nodes,), jnp.float32).at[col].add(1.0)
    deg_inv_sqrt = jnp.where(deg > 0, deg ** -0.5, 0.0)
    norm = deg_inv_sqrt[row] * deg_inv_sqrt[col]
    aT = jnp.zeros((n_pad, n_pad), jnp.float32).at[row, col].add(norm)
    return aT.astype(jnp.bfloat16)


def lightgcn_forward(embedding_weight, edge_index, num_users, num_items,
                     num_layers, *, force_tiled=False):
    num_nodes = num_users + num_items
    d = embedding_weight.shape[1]

    n_pad = _round_up(max(num_nodes, 128), 128)
    d_pad = _round_up(max(d, 16), 16)   # multiple of 16 for bf16 sublane packing

    aT = build_normalized_adjacency_T(edge_index, num_nodes, n_pad)

    # Transposed, zero-padded layer-0 embeddings: (d_pad, n_pad) f32.
    xT0 = jnp.zeros((d_pad, n_pad), jnp.float32)
    xT0 = xT0.at[:d, :num_nodes].set(embedding_weight.astype(jnp.float32).T)

    if num_layers == 0:
        meanT = xT0
    elif (not force_tiled) and _fused_vmem_bytes(d_pad, n_pad) <= _FUSED_VMEM_BUDGET:
        meanT = _fused_forward(xT0, aT, num_layers, d_pad, n_pad)
    else:
        meanT = _tiled_forward(xT0, aT, num_layers, d_pad, n_pad)

    emb = meanT[:d, :num_nodes].T          # (num_nodes, d) f32, wrapper-side slice/T
    return emb[:num_users], emb[num_users:]


def lightgcn_reference(embedding_weight, edge_index, num_users, num_items,
                       num_layers):
    """Pure-JAX f32 reference matching the PyTorch module exactly."""
    num_nodes = num_users + num_items
    row, col = edge_index[0], edge_index[1]
    deg = jnp.zeros((num_nodes,), jnp.float32).at[col].add(1.0)
    deg_inv_sqrt = jnp.where(deg > 0, deg ** -0.5, 0.0)
    norm = deg_inv_sqrt[row] * deg_inv_sqrt[col]
    x = embedding_weight.astype(jnp.float32)
    acc = x
    for _ in range(num_layers):
        msg = norm[:, None] * x[row]                    # message(x_j, norm)
        x = jnp.zeros_like(x).at[col].add(msg)          # aggr='add' at targets
        acc = acc + x
    emb = acc / float(num_layers + 1)
    return emb[:num_users], emb[num_users:]


def xavier_uniform(key, shape, dtype=jnp.float32):
    fan_in, fan_out = shape[0], shape[1]
    bound = (6.0 / (fan_in + fan_out)) ** 0.5
    return jax.random.uniform(key, shape, dtype=dtype, minval=-bound, maxval=bound)


if __name__ == "__main__":
    num_users = 8
    num_items = 16
    embedding_dim = 32
    num_layers = 2
    num_nodes = num_users + num_items

    key = jax.random.PRNGKey(0)
    k_emb, k_u, k_i = jax.random.split(key, 3)

    # Deterministic nn.Embedding weight (xavier_uniform init).
    emb_weight = xavier_uniform(k_emb, (num_nodes, embedding_dim))

    # Deterministic bipartite user-item interaction edges, both directions.
    n_inter = 64
    users = jax.random.randint(k_u, (n_inter,), 0, num_users)
    items = jax.random.randint(k_i, (n_inter,), num_users, num_nodes)
    row = jnp.concatenate([users, items])
    col = jnp.concatenate([items, users])
    edge_index = jnp.stack([row, col], axis=0).astype(jnp.int32)   # (2, 128)

    # Fused (all layers in one pallas_call) path.
    u_f, i_f = lightgcn_forward(emb_weight, edge_index, num_users, num_items,
                                num_layers)
    # Tiled per-layer fallback path, forced so it stays exercised/tested.
    u_t, i_t = lightgcn_forward(emb_weight, edge_index, num_users, num_items,
                                num_layers, force_tiled=True)
    # Pure-JAX f32 reference (correctness tolerance check per review).
    u_r, i_r = lightgcn_reference(emb_weight, edge_index, num_users, num_items,
                                  num_layers)
    jax.block_until_ready((u_f, i_f, u_t, i_t, u_r, i_r))

    assert u_f.shape == (num_users, embedding_dim)
    assert i_f.shape == (num_items, embedding_dim)
    assert u_t.shape == (num_users, embedding_dim)
    assert i_t.shape == (num_items, embedding_dim)
    for out, ref in ((u_f, u_r), (i_f, i_r), (u_t, u_r), (i_t, i_r)):
        assert bool(jnp.all(jnp.isfinite(out)))
        assert bool(jnp.allclose(out, ref, rtol=2e-2, atol=2e-2)), \
            float(jnp.max(jnp.abs(out - ref)))
    print("KERNEL_OK")
</pallas_src>

<mosaic_0001>
module attributes {stable_mosaic.version = 11 : i64} {
  func.func @_fused_kernel(%arg0: i32, %arg1: memref<32x128xf32, #tpu.memory_space<vmem>>, %arg2: memref<128x128xbf16, #tpu.memory_space<vmem>>, %arg3: memref<32x128xf32, #tpu.memory_space<vmem>>, %arg4: memref<32x128xbf16, #tpu.memory_space<vmem>>) attributes {dimension_semantics = [#tpu.dimension_semantics<arbitrary>], iteration_bounds = array<i64: 2>, scalar_prefetch = 0 : i64, scratch_operands = 1 : i64, tpu.core_type = #tpu.core_type<tc>, window_params = [{pipeline_mode = #tpu.pipeline_mode<synchronous>, transform_indices = @transform_0, window_bounds = array<i64: 32, 128>}, {pipeline_mode = #tpu.pipeline_mode<synchronous>, transform_indices = @transform_1, window_bounds = array<i64: 128, 128>}, {pipeline_mode = #tpu.pipeline_mode<synchronous>, transform_indices = @transform_2, window_bounds = array<i64: 32, 128>}]} {
    %c0_i32 = arith.constant 0 : i32
    %0 = arith.cmpi eq, %arg0, %c0_i32 : i32
    %1 = arith.extui %0 : i1 to i32
    %c0_i32_0 = arith.constant 0 : i32
    %2 = arith.cmpi ne, %1, %c0_i32_0 : i32
    scf.if %2 {
      %c0_11 = arith.constant 0 : index
      %c0_12 = arith.constant 0 : index
      %14 = vector.load %arg1[%c0_11, %c0_12] : memref<32x128xf32, #tpu.memory_space<vmem>>, vector<32x128xf32>
      %15 = arith.truncf %14 : vector<32x128xf32> to vector<32x128xbf16>
      %c0_13 = arith.constant 0 : index
      %c0_14 = arith.constant 0 : index
      %16 = vector.load %arg4[%c0_13, %c0_14] : memref<32x128xbf16, #tpu.memory_space<vmem>>, vector<32x128xbf16>
      tpu.vector_store %arg4[%c0_13, %c0_14], %15 {strides = array<i32>} : memref<32x128xbf16, #tpu.memory_space<vmem>>, vector<32x128xbf16>,
      %c0_15 = arith.constant 0 : index
      %c0_16 = arith.constant 0 : index
      %17 = vector.load %arg3[%c0_15, %c0_16] : memref<32x128xf32, #tpu.memory_space<vmem>>, vector<32x128xf32>
      tpu.vector_store %arg3[%c0_15, %c0_16], %14 {strides = array<i32>} : memref<32x128xf32, #tpu.memory_space<vmem>>, vector<32x128xf32>,
    } else {
    }
    %c0 = arith.constant 0 : index
    %c0_1 = arith.constant 0 : index
    %3 = vector.load %arg4[%c0, %c0_1] : memref<32x128xbf16, #tpu.memory_space<vmem>>, vector<32x128xbf16>
    %c0_2 = arith.constant 0 : index
    %c0_3 = arith.constant 0 : index
    %4 = vector.load %arg2[%c0_2, %c0_3] : memref<128x128xbf16, #tpu.memory_space<vmem>>, vector<128x128xbf16>
    %cst = arith.constant dense<0.000000e+00> : vector<32x128xf32>
    %5 = tpu.matmul %3, %4, %cst {dimension_numbers = #tpu.dot_dimension_numbers<[1], [0], [0], [1], [0, 0, 1, 1], [], []>} : vector<32x128xbf16>, vector<128x128xbf16>, vector<32x128xf32> -> vector<32x128xf32>
    %c0_4 = arith.constant 0 : index
    %c0_5 = arith.constant 0 : index
    %6 = vector.load %arg3[%c0_4, %c0_5] : memref<32x128xf32, #tpu.memory_space<vmem>>, vector<32x128xf32>
    %7 = arith.addf %6, %5 : vector<32x128xf32>
    %c0_6 = arith.constant 0 : index
    %c0_7 = arith.constant 0 : index
    %8 = vector.load %arg3[%c0_6, %c0_7] : memref<32x128xf32, #tpu.memory_space<vmem>>, vector<32x128xf32>
    tpu.vector_store %arg3[%c0_6, %c0_7], %7 {strides = array<i32>} : memref<32x128xf32, #tpu.memory_space<vmem>>, vector<32x128xf32>,
    %9 = arith.truncf %5 : vector<32x128xf32> to vector<32x128xbf16>
    %c0_8 = arith.constant 0 : index
    %c0_9 = arith.constant 0 : index
    %10 = vector.load %arg4[%c0_8, %c0_9] : memref<32x128xbf16, #tpu.memory_space<vmem>>, vector<32x128xbf16>
    tpu.vector_store %arg4[%c0_8, %c0_9], %9 {strides = array<i32>} : memref<32x128xbf16, #tpu.memory_space<vmem>>, vector<32x128xbf16>,
    %c1_i32 = arith.constant 1 : i32
    %11 = arith.cmpi eq, %arg0, %c1_i32 : i32
    %12 = arith.extui %11 : i1 to i32
    %c0_i32_10 = arith.constant 0 : i32
    %13 = arith.cmpi ne, %12, %c0_i32_10 : i32
    scf.if %13 {
      %c0_11 = arith.constant 0 : index
      %c0_12 = arith.constant 0 : index
      %14 = vector.load %arg3[%c0_11, %c0_12] : memref<32x128xf32, #tpu.memory_space<vmem>>, vector<32x128xf32>
      %cst_13 = arith.constant 0.333333343 : f32
      %15 = vector.broadcast %cst_13 : f32 to vector<32x128xf32>
      %16 = arith.mulf %14, %15 : vector<32x128xf32>
      %c0_14 = arith.constant 0 : index
      %c0_15 = arith.constant 0 : index
      %17 = vector.load %arg3[%c0_14, %c0_15] : memref<32x128xf32, #tpu.memory_space<vmem>>, vector<32x128xf32>
      tpu.vector_store %arg3[%c0_14, %c0_15], %16 {strides = array<i32>} : memref<32x128xf32, #tpu.memory_space<vmem>>, vector<32x128xf32>,
    } else {
    }
    return
  }
  func.func @transform_0(%arg0: i32) -> (i32, i32) {
    %c0_i32 = arith.constant 0 : i32
    %c0_i32_0 = arith.constant 0 : i32
    %c0_i32_1 = arith.constant 0 : i32
    return %c0_i32, %c0_i32_0 : i32, i32
  }
  func.func @transform_1(%arg0: i32) -> (i32, i32) {
    %c0_i32 = arith.constant 0 : i32
    %c0_i32_0 = arith.constant 0 : i32
    %c0_i32_1 = arith.constant 0 : i32
    return %c0_i32, %c0_i32_0 : i32, i32
  }
  func.func @transform_2(%arg0: i32) -> (i32, i32) {
    %c0_i32 = arith.constant 0 : i32
    %c0_i32_0 = arith.constant 0 : i32
    %c0_i32_1 = arith.constant 0 : i32
    return %c0_i32, %c0_i32_0 : i32, i32
  }
}

</mosaic_0001>

<bundles_post_ra>
// kernel: tpu_custom_call.1
= control target key start
LH: loop header
LB: loop body
LE: loop exit
PB: predicated region body
PF: predicated region fallthrough
CT: control target
= control target key end

     0   :  { %7 = vsyncpa [#allocation4], 0  ;;  %s741_s0 = inlined_call_operand.hbm [shape: f32[32,128], index: 0, kind: input, shape index: {}]   ;;  %s742_s1 = inlined_call_operand.hbm [shape: bf16[128,128], index: 1, kind: input, shape index: {}]   ;;  %s743_s2 = inlined_call_operand.hbm [shape: f32[32,128], index: 2, kind: output, shape index: {}]  }
   0x1   :  { %8 = vsyncpa [#allocation7], 0 }
   0x2   :  { %9 = vsyncpa [#allocation5], 0  ;;  %s671_s9 = smov 0  }
   0x3 LB: > { %s647_s10 = smov [#allocation3]   ;;  %s677_s12 = sadd.s32 4294967295, %s645_s9   ;;  %s645_s9 = sphi %s671_s9, %s15_s9  }
   0x4   : > { %s95_s11 = sshll.u32 %s647_s10, 4  ;;  %p409_p0 = scmp.ge.s32.totalorder %s645_s9, 1  ;;  %s96_s11 = int_to_ptr.vmem [resolvable:$true] %s95_s11 }
   0x5   : > { %p83_p1 = scmp.lt.s32.totalorder %s645_s9, 3  ;;  %p518_p4 = scmp.eq.s32.totalorder %s677_s12, 0 }
   0x6   : > { %s648_s14 = smov [#allocation6]   ;;  %s562_s17 = scalar_lea.vmem %s96_s11, 512 }
   0x7   : > { %p682_p3 = pnand %p409_p0, %p83_p1  ;;  %s108_s15 = sshll.u32 %s648_s14, 4  ;;  %s109_s15 = int_to_ptr.vmem [resolvable:$true] %s108_s15 }
   0x8   : > { %p563_p8 = scmp.ne.s32.totalorder %s96_s11, %s562_s17  ;;  %p570_p11 = scmp.lt.s32.totalorder %s96_s11, %s96_s11 }
   0x9   : > { %p511_p5 = pneg %p682_p3  ;;  %p571_p12 = scmp.lt.s32.totalorder %s562_s17, %s562_s17 }
   0xb   : > { %p691_p6 = pnand %p518_p4, %p511_p5  ;;  %p572_p13 = por %p571_p12, %p570_p11 }
   0xd   : > { %p553_p7 = pneg %p691_p6 }
   0xf   : > { %p565_p9 = pnand %p563_p8, %p553_p7 }
  0x11   : > { %p566_p10 = pneg %p565_p9 }
  0x13   : > { %p573_p0 = pnand %p572_p13, %p566_p10 }
  0x15   : > { %576 = shalt.err (!%p573_p0)
}
  0x16   : > { %s649_s18 = smov 128   ;;  %s650_s19 = smov 8  }
  0x17   : > { %514 = dma.hbm_to_vmem [thread:$0]  (!%p691_p6), %s741_s0, 512, %s96_s11, [#allocation4], %s649_s18, %s649_s18, %s650_s19  }
  0x18   : > { %s588_s22 = scalar_lea.vmem %s109_s15, 1024  ;;  %p596_p9 = scmp.lt.s32.totalorder %s109_s15, %s109_s15 }
  0x19   : > { %p589_p1 = scmp.ne.s32.totalorder %s109_s15, %s588_s22  ;;  %p597_p2 = scmp.lt.s32.totalorder %s588_s22, %s588_s22 }
  0x1b   : > { %p591_p5 = pnand %p589_p1, %p553_p7  ;;  %p598_p11 = por %p597_p2, %p596_p9 }
  0x1d   : > { %p592_p8 = pneg %p591_p5 }
  0x1f   : > { %p599_p10 = pnand %p598_p11, %p592_p8 }
  0x21   : > { %602 = shalt.err (!%p599_p10)
}
  0x22   : > { %s651_s23 = smov 64   ;;  %s652_s24 = smov 4  }
  0x23   : > { %517 = dma.hbm_to_vmem [thread:$0]  (!%p691_p6), %s742_s1, 1024, %s109_s15, [#allocation7], %s651_s23, %s651_s23, %s652_s24  }
  0x24   : > { %124 = sbr.rel (%p682_p3) target bundleno = 317 (0x13d), region = 28 }
  0x29   : > { %632 = dma.done.wait (%p518_p4), [#allocation4], 512  }
  0x2a   : > { %634 = vsyncadd (%p518_p4), [#allocation4], 4294966784 }
  0x2b   : > { %636 = dma.done.wait (%p518_p4), [#allocation7], 1024  }
  0x2c   : > { %638 = vsyncadd (%p518_p4), [#allocation7], 4294966272  ;;  %p746_p2 = scmp.ne.s32.totalorder %s677_s12, 0 }
  0x2e   : > { %144 = sbr.rel (%p746_p2) target bundleno = 56 (0x38), region = 40 }
  0x33   : > { %v145_v0 = vld [vmem:[#allocation3] sm:$0xff]  ;;  %v146_v1 = vld [vmem:[#allocation3 + $0x8] sm:$0xff]  ;;  %v147_v2 = vld [vmem:[#allocation3 + $0x10] sm:$0xff] }
  0x34   : > { %v450_v3 = vpack.c.bf16 %v146_v1, %v145_v0  ;;  %169 = vst [vmem:[#allocation8] sm:$0xff] %v145_v0  ;;  %170 = vst [vmem:[#allocation8 + $0x8] sm:$0xff] %v146_v1  ;;  %v148_v4 = vld [vmem:[#allocation3 + $0x18] sm:$0xff] }
  0x35   : > { %171 = vst [vmem:[#allocation8 + $0x10] sm:$0xff] %v147_v2  ;;  %v455_v5 = vpack.c.bf16 %v148_v4, %v147_v2  ;;  %172 = vst [vmem:[#allocation8 + $0x18] sm:$0xff] %v148_v4 }
  0x36   : > { %451 = vst [vmem:[#allocation2] sm:$0xff] %v450_v3  }
  0x37   : > { %467 = vst [vmem:[#allocation2 + $0x8] sm:$0xff] %v455_v5  }
  0x38 PF: > { %v541_v6 = vld [vmem:[#allocation6 + $0x38] sm:$0xff]   ;;  %v542_v7 = vld [vmem:[#allocation6 + $0x30] sm:$0xff]   ;;  %v543_v8 = vld [vmem:[#allocation6 + $0x28] sm:$0xff]   ;;  %p434_p3 = scmp.ne.s32.totalorder %s677_s12, 1 }
  0x39   : > { %479 = vmatprep.subr.bf16.mxu0 %v541_v6  ;;  %v544_v9 = vld [vmem:[#allocation6 + $0x20] sm:$0xff]   ;;  %v545_v11 = vld [vmem:[#allocation6 + $0x18] sm:$0xff]   ;;  %v546_v12 = vld [vmem:[#allocation6 + $0x10] sm:$0xff]  }
  0x3a   : > { %480 = vmatpush3.bf16.msra.mxu0 %v541_v6  ;;  %v547_v13 = vld [vmem:[#allocation6 + $0x8] sm:$0xff]   ;;  %v548_v14 = vld [vmem:[#allocation6] sm:$0xff]  }
  0x3b   : > { %481 = vmatprep.subr.bf16.mxu0 %v542_v7  ;;  %v302_v18 = vld [vmem:[#allocation8] sm:$0xff]  ;;  %v303_v24 = vld [vmem:[#allocation8 + $0x8] sm:$0xff] }
  0x3c   : > { %v304_v16 = vld [vmem:[#allocation8 + $0x10] sm:$0xff]  ;;  %v305_v21 = vld [vmem:[#allocation8 + $0x18] sm:$0xff] }
  0x3d   : > { %v549_v10 = vld [vmem:[#allocation2] sm:$0xff]  }
  0x3e   : > { %482 = vmatpush3.bf16.msra.mxu0 %v542_v7  ;;  %495 = vmatprep.mubr.bf16.mxu0 %v549_v10  ;;  %v550_v15 = vld [vmem:[#allocation2 + $0x8] sm:$0xff]  }
  0x3f   : > { %483 = vmatprep.subr.bf16.mxu0 %v543_v8 }
  0x42   : > { %484 = vmatpush3.bf16.msra.mxu0 %v543_v8 }
  0x43   : > { %485 = vmatprep.subr.bf16.mxu0 %v544_v9 }
  0x46   : > { %486 = vmatpush3.bf16.msra.mxu0 %v544_v9 }
  0x47   : > { %487 = vmatprep.subr.bf16.mxu0 %v545_v11 }
  0x4a   : > { %488 = vmatpush3.bf16.msra.mxu0 %v545_v11 }
  0x4b   : > { %489 = vmatprep.subr.bf16.mxu0 %v546_v12 }
  0x4e   : > { %490 = vmatpush3.bf16.msra.mxu0 %v546_v12 }
  0x4f   : > { %491 = vmatprep.subr.bf16.mxu0 %v547_v13 }
  0x52   : > { %492 = vmatpush3.bf16.msra.mxu0 %v547_v13 }
  0x53   : > { %493 = vmatprep.subr.bf16.mxu0 %v548_v14 }
  0x56   : > { %494 = vmatpush3.bf16.msra.mxu0 %v548_v14 }
  0x59   : > { %496 = vmatmul.mubr.bf16.vlgmr.msra.gmra.mxu0 %v550_v15 }
 0x119   : > { %v497_v17 = vpop.f32.mrf.mxu0 }
 0x11a   : > { %v308_v19 = vadd.f32 %v497_v17, %v304_v16 }
 0x11b   : > { %v287_v20 = vpop.f32.mrf.mxu0 }
 0x11c   : > { %312 = vst [vmem:[#allocation8 + $0x10] sm:$0xff] %v308_v19  ;;  %v306_v22 = vadd.f32 %v302_v18, %v287_v20 }
 0x11d   : > { %v498_v23 = vpop.f32.mrf.mxu0 }
 0x11e   : > { %310 = vst [vmem:[#allocation8] sm:$0xff] %v306_v22  ;;  %v309_v25 = vadd.f32 %v498_v23, %v305_v21  ;;  %v465_v26 = vpack.c.bf16 %v498_v23, %v497_v17  ;;  %337 = sbr.rel (%p434_p3) target bundleno = 301 (0x12d), region = 44 }
 0x11f   : > { %v290_v27 = vpop.f32.mrf.mxu0 }
 0x120   : > { %313 = vst [vmem:[#allocation8 + $0x18] sm:$0xff] %v309_v25  ;;  %468 = vst [vmem:[#allocation2 + $0x8] sm:$0xff] %v465_v26   ;;  %v307_v28 = vadd.f32 %v303_v24, %v290_v27  ;;  %v460_v29 = vpack.c.bf16 %v290_v27, %v287_v20 }
 0x122   : > { %311 = vst [vmem:[#allocation8 + $0x8] sm:$0xff] %v307_v28  ;;  %461 = vst [vmem:[#allocation2] sm:$0xff] %v460_v29  }
 0x123   : > { %v340_v32 = vld [vmem:[#allocation8 + $0x10] sm:$0xff] }
 0x124   : > { %v344_v35 = vmul.f32 0.33333334, %v340_v32 }
 0x125   : > { %v338_v30 = vld [vmem:[#allocation8] sm:$0xff] }
 0x126   : > { %v342_v33 = vmul.f32 0.33333334, %v338_v30  ;;  %348 = vst [vmem:[#allocation8 + $0x10] sm:$0xff] %v344_v35 }
 0x127   : > { %v341_v36 = vld [vmem:[#allocation8 + $0x18] sm:$0xff] }
 0x128   : > { %346 = vst [vmem:[#allocation8] sm:$0xff] %v342_v33  ;;  %v345_v37 = vmul.f32 0.33333334, %v341_v36 }
 0x129   : > { %v339_v31 = vld [vmem:[#allocation8 + $0x8] sm:$0xff] }
 0x12a   : > { %v343_v34 = vmul.f32 0.33333334, %v339_v31  ;;  %349 = vst [vmem:[#allocation8 + $0x18] sm:$0xff] %v345_v37 }
 0x12c   : > { %347 = vst [vmem:[#allocation8 + $0x8] sm:$0xff] %v343_v34 }
 0x12d PF: > { %p522_p4 = scmp.eq.s32.totalorder %s677_s12, 1  ;;  %s653_s27 = smov [#allocation8]  }
 0x12e   : > { %s356_s28 = sshll.u32 %s653_s27, 4  ;;  %s357_s28 = int_to_ptr.vmem [resolvable:$true] %s356_s28 }
 0x12f   : > { %s603_s29 = scalar_lea.vmem %s357_s28, 512  ;;  %p610_p13 = scmp.lt.s32.totalorder %s357_s28, %s357_s28 }
 0x130   : > { %p604_p6 = scmp.ne.s32.totalorder %s357_s28, %s603_s29  ;;  %p611_p0 = scmp.lt.s32.totalorder %s603_s29, %s603_s29 }
 0x132   : > { %p605_p7 = pnand %p604_p6, %p522_p4  ;;  %p612_p1 = por %p611_p0, %p610_p13 }
 0x134   : > { %p606_p12 = pneg %p605_p7 }
 0x136   : > { %p613_p5 = pnand %p612_p1, %p606_p12 }
 0x138   : > { %616 = shalt.err (!%p613_p5)
}
 0x139   : > { %s654_s30 = smov 128   ;;  %s655_s3 = smov 8  }
 0x13a   : > { %508 = dma.vmem_to_hbm [thread:$0]  (%p522_p4), %s357_s28, 512, %s743_s2, [#allocation5], %s654_s30, %s654_s30, %s655_s3  }
 0x13b   : > { %640 = dma.done.wait (%p522_p4), [#allocation5], 512  }
 0x13c   : > { %642 = vsyncadd (%p522_p4), [#allocation5], 4294966784 }
 0x13d PF: > { %s15_s9 = sadd.s32 1, %s645_s9  }
 0x13e   : > { %p12_p8 = scmp.ge.s32.totalorder %s15_s9, 4  }
 0x140   :  { %14 = sbr.rel (!%p12_p8) target bundleno = 3 (0x3), region = 69 }
 0x145   :  { %372 = vsyncpa [#allocation4], 1 }
 0x146   :  { %374 = vsyncpa [#allocation4 + $0x1], 1 }
 0x147   :  { %375 = vsyncpa [#allocation7], 1 }
 0x148   :  { %376 = vsyncpa [#allocation5], 1 }
 0x149   :  { %378 = vsyncpa [#allocation5 + $0x1], 1 }

</bundles_post_ra>
